<compile_context>
chip_gen: v5e
topology: v5e:2x2
jax: 0.10.0
libtpu: 0.0.40
codegen_flags: <defaults>
</compile_context>

<pallas_src>
import functools

import jax
import jax.numpy as jnp
from jax.experimental import pallas as pl
from jax.experimental.pallas import tpu as pltpu

A_PAD = 128  # lane-dense output width; mu lives in columns [0, action_dim)


def _round_up(x, m):
    return (x + m - 1) // m * m


# ----------------------------------------------------------------------------
# Pallas kernel: fused (concat-free) 3-layer policy MLP -> tanh(mu)
# ----------------------------------------------------------------------------
def _actor_kernel(obs_ref, t_ref,
                  w1o_ref, w1t_ref, b1_ref,
                  w2_ref, b2_ref,
                  w3_ref, b3_ref,
                  mu_ref):
    # Layer 1: equivalent to concat([obs, t], -1) @ W1 + b1, with W1 split by
    # rows so the concatenation never materializes.  obs arrives in bf16.
    x = jnp.dot(obs_ref[...], w1o_ref[...],
                preferred_element_type=jnp.float32)
    x = x + t_ref[...] * w1t_ref[...]                 # (TB,1)*(1,H), all f32
    x = jnp.maximum(x + b1_ref[...], 0.0)             # ReLU in f32

    # Layer 2
    x = jnp.dot(x.astype(jnp.bfloat16), w2_ref[...],
                preferred_element_type=jnp.float32)
    x = jnp.maximum(x + b2_ref[...], 0.0)

    # Layer 3 (output zero-padded to A_PAD lanes for an unmasked, lane-dense
    # store; padded columns stay zero through tanh).
    x = jnp.dot(x.astype(jnp.bfloat16), w3_ref[...],
                preferred_element_type=jnp.float32)
    # TODO(synk): CPGPolicy internals are not specified in the module; the
    # policy is modelled as the standard DrQ-v2 MLP head with a tanh squash.
    mu_ref[...] = jnp.tanh(x + b3_ref[...]).astype(mu_ref.dtype)


def _normalize_t(obs, t):
    """Mirror the rank handling of DrQv2Actor.forward for the batched cases."""
    # TODO(synk): the unbatched `torch.cat([obs, t[0]])` branch is not
    # supported; only the batched branches (same rank / t.unsqueeze) are.
    if t.ndim == obs.ndim:
        t2 = t
    else:
        t2 = t[..., None]                    # t.unsqueeze(1) for 2-D obs
    return t2.astype(jnp.float32)


# ----------------------------------------------------------------------------
# Wrapper
# ----------------------------------------------------------------------------
@functools.partial(jax.jit, static_argnames=("action_dim",))
def drqv2_actor_forward(obs, t, std, params, action_dim):
    """Pallas implementation of DrQv2Actor.forward.

    obs: (B, feature_dim) f32, t: (B,) or (B, 1) f32, std: scalar.
    Returns (mu, std) — the TruncatedNormal parameters, each (B, action_dim).
    """
    obs = obs.astype(jnp.float32)
    t = _normalize_t(obs, t)

    w1o, w1t, b1, w2, b2, w3p, b3p = params
    B, F = obs.shape
    H = w1o.shape[1]

    # --- Batch tiling --------------------------------------------------------
    # bf16 packs 16 sublanes per vreg -> tiles are multiples of 16 rows; keep
    # >=2 grid steps (>=4 when the batch allows) so the obs/out tile DMAs
    # pipeline behind the matmuls and v7x can shard tiles across both
    # TensorCores; rows per tile capped at 512.
    b16 = _round_up(B, 16)
    if b16 <= 16:
        tile_b = b16
    else:
        target_tiles = 4 if b16 >= 64 else 2
        tile_b = min(512, _round_up(pl.cdiv(b16, target_tiles), 16))
    b_pad = _round_up(b16, tile_b)
    grid = (b_pad // tile_b,)

    if b_pad != B:
        obs = jnp.pad(obs, ((0, b_pad - B), (0, 0)))
        t = jnp.pad(t, ((0, b_pad - B), (0, 0)))
    obs_bf = obs.astype(jnp.bfloat16)      # stream obs in bf16 (half the DMA)

    def _resident(shape):
        # Full-array block, same block every grid step -> stays in VMEM; a
        # single buffer is enough (never re-DMA'd), halving resident VMEM.
        return pl.BlockSpec(shape, lambda i: (0, 0),
                            pipeline_mode=pl.Buffered(1))

    in_specs = [
        pl.BlockSpec((tile_b, F), lambda i: (i, 0)),     # obs tile (bf16)
        pl.BlockSpec((tile_b, 1), lambda i: (i, 0)),     # t tile   (f32)
        _resident(w1o.shape), _resident(w1t.shape), _resident(b1.shape),
        _resident(w2.shape), _resident(b2.shape),
        _resident(w3p.shape), _resident(b3p.shape),
    ]
    out_specs = pl.BlockSpec((tile_b, A_PAD), lambda i: (i, 0))

    params_bytes = sum(p.size * p.dtype.itemsize for p in params)
    cost = pl.CostEstimate(
        flops=2 * b_pad * (F * H + H * H + H * A_PAD) + 4 * b_pad * H,
        transcendentals=b_pad * A_PAD,
        bytes_accessed=(obs_bf.size * 2 + t.size * 4 + params_bytes
                        + b_pad * A_PAD * 2),
    )

    mu_full = pl.pallas_call(
        _actor_kernel,
        out_shape=jax.ShapeDtypeStruct((b_pad, A_PAD), jnp.bfloat16),
        grid=grid,
        in_specs=in_specs,
        out_specs=out_specs,
        compiler_params=pltpu.CompilerParams(
            dimension_semantics=("parallel",)),
        cost_estimate=cost,
    )(obs_bf, t, w1o, w1t, b1, w2, b2, w3p, b3p)

    # TODO(synk): if the consumer can take the lane-padded bf16 slab directly,
    # skip this slice/cast to avoid re-reading the slab in a separate XLA op.
    mu = mu_full[:B, :action_dim].astype(jnp.float32)
    std_arr = jnp.full_like(mu, std)        # torch.ones_like(mu) * std
    # TODO(synk): utils.TruncatedNormal has no Pallas equivalent; the
    # distribution parameters (mu, std) are returned instead of a dist object.
    return mu, std_arr


# ----------------------------------------------------------------------------
# Deterministic parameter construction (orthogonal weights, zero biases),
# pre-packed for the kernel:
#  * W1 split into obs rows (bf16) and the single t row (f32),
#  * hidden_dim zero-padded to a multiple of 256 (MXU alignment on all gens;
#    zero pads are exact through ReLU),
#  * W3 zero-padded to A_PAD lanes, big weights in bf16, biases/w1t in f32.
# ----------------------------------------------------------------------------
def make_params(key, feature_dim, action_dim, hidden_dim):
    in_dim = feature_dim + 1
    h_pad = _round_up(hidden_dim, 256)
    ortho = jax.nn.initializers.orthogonal()
    k1, k2, k3 = jax.random.split(key, 3)
    w1 = ortho(k1, (in_dim, hidden_dim), jnp.float32)        # (F+1, H)
    w2 = ortho(k2, (hidden_dim, hidden_dim), jnp.float32)    # (H, H)
    w3 = ortho(k3, (hidden_dim, action_dim), jnp.float32)    # (H, A)

    w1p = jnp.zeros((in_dim, h_pad), jnp.float32).at[:, :hidden_dim].set(w1)
    w2p = jnp.zeros((h_pad, h_pad), jnp.float32) \
             .at[:hidden_dim, :hidden_dim].set(w2)
    w3p = jnp.zeros((h_pad, A_PAD), jnp.float32) \
             .at[:hidden_dim, :action_dim].set(w3)

    w1_obs = w1p[:feature_dim].astype(jnp.bfloat16)          # (F, Hp) bf16
    w1_t = w1p[feature_dim:]                                 # (1, Hp) f32
    b1 = jnp.zeros((1, h_pad), jnp.float32)
    b2 = jnp.zeros((1, h_pad), jnp.float32)
    b3 = jnp.zeros((1, A_PAD), jnp.float32)
    return (w1_obs, w1_t, b1, w2p.astype(jnp.bfloat16), b2,
            w3p.astype(jnp.bfloat16), b3)


# ----------------------------------------------------------------------------
# Pure-JAX reference (identical bf16 quantization of streamed obs, weights,
# hidden activations and the stored mu slab).
# ----------------------------------------------------------------------------
def reference_forward(obs, t, std, params, action_dim):
    obs = obs.astype(jnp.float32)
    t = _normalize_t(obs, t)
    w1o, w1t, b1, w2, b2, w3p, b3p = params

    x = jnp.dot(obs.astype(jnp.bfloat16), w1o,
                preferred_element_type=jnp.float32)
    x = jnp.maximum(x + t * w1t + b1, 0.0)
    x = jnp.dot(x.astype(jnp.bfloat16), w2,
                preferred_element_type=jnp.float32)
    x = jnp.maximum(x + b2, 0.0)
    x = jnp.dot(x.astype(jnp.bfloat16), w3p,
                preferred_element_type=jnp.float32)
    mu_full = jnp.tanh(x + b3p).astype(jnp.bfloat16).astype(jnp.float32)
    mu = mu_full[:, :action_dim]
    return mu, jnp.full_like(mu, std)


if __name__ == "__main__":
    B = 8
    feature_dim = 32
    action_dim = 6          # e.g. action_shape = (6,)
    hidden_dim = 32
    init_std = 0.5

    key = jax.random.PRNGKey(0)
    k_obs, k_t, k_par = jax.random.split(key, 3)

    obs = jax.random.normal(k_obs, (B, feature_dim), jnp.float32)
    t = jax.random.uniform(k_t, (B,), jnp.float32)   # rank 1: gets unsqueezed
    params = make_params(k_par, feature_dim, action_dim, hidden_dim)

    mu, std_arr = drqv2_actor_forward(obs, t, init_std, params, action_dim)
    mu = jax.block_until_ready(mu)
    std_arr = jax.block_until_ready(std_arr)

    r_mu, r_std = reference_forward(obs, t, init_std, params, action_dim)

    assert mu.shape == (B, action_dim) and std_arr.shape == (B, action_dim)
    assert jnp.allclose(mu, r_mu, atol=1e-2, rtol=1e-2), \
        float(jnp.max(jnp.abs(mu - r_mu)))
    assert jnp.allclose(std_arr, r_std)

    print("KERNEL_OK")
</pallas_src>

<mosaic_0001>
module attributes {stable_mosaic.version = 11 : i64} {
  func.func @_actor_kernel(%arg0: i32, %arg1: memref<16x32xbf16, #tpu.memory_space<vmem>>, %arg2: memref<16x1xf32, #tpu.memory_space<vmem>>, %arg3: memref<32x256xbf16, #tpu.memory_space<vmem>>, %arg4: memref<1x256xf32, #tpu.memory_space<vmem>>, %arg5: memref<1x256xf32, #tpu.memory_space<vmem>>, %arg6: memref<256x256xbf16, #tpu.memory_space<vmem>>, %arg7: memref<1x256xf32, #tpu.memory_space<vmem>>, %arg8: memref<256x128xbf16, #tpu.memory_space<vmem>>, %arg9: memref<1x128xf32, #tpu.memory_space<vmem>>, %arg10: memref<16x128xbf16, #tpu.memory_space<vmem>>) attributes {dimension_semantics = [#tpu.dimension_semantics<parallel>], iteration_bounds = array<i64: 1>, scalar_prefetch = 0 : i64, scratch_operands = 0 : i64, tpu.core_type = #tpu.core_type<tc>, window_params = [{transform_indices = @transform_0, window_bounds = array<i64: 16, 32>}, {transform_indices = @transform_1, window_bounds = array<i64: 16, 1>}, {pipeline_mode = #tpu.pipeline_mode<synchronous>, transform_indices = @transform_2, window_bounds = array<i64: 32, 256>}, {pipeline_mode = #tpu.pipeline_mode<synchronous>, transform_indices = @transform_3, window_bounds = array<i64: 1, 256>}, {pipeline_mode = #tpu.pipeline_mode<synchronous>, transform_indices = @transform_4, window_bounds = array<i64: 1, 256>}, {pipeline_mode = #tpu.pipeline_mode<synchronous>, transform_indices = @transform_5, window_bounds = array<i64: 256, 256>}, {pipeline_mode = #tpu.pipeline_mode<synchronous>, transform_indices = @transform_6, window_bounds = array<i64: 1, 256>}, {pipeline_mode = #tpu.pipeline_mode<synchronous>, transform_indices = @transform_7, window_bounds = array<i64: 256, 128>}, {pipeline_mode = #tpu.pipeline_mode<synchronous>, transform_indices = @transform_8, window_bounds = array<i64: 1, 128>}, {transform_indices = @transform_9, window_bounds = array<i64: 16, 128>}]} {
    %c0 = arith.constant 0 : index
    %c0_0 = arith.constant 0 : index
    %0 = vector.load %arg1[%c0, %c0_0] : memref<16x32xbf16, #tpu.memory_space<vmem>>, vector<16x32xbf16>
    %c0_1 = arith.constant 0 : index
    %c0_2 = arith.constant 0 : index
    %1 = vector.load %arg3[%c0_1, %c0_2] : memref<32x256xbf16, #tpu.memory_space<vmem>>, vector<32x256xbf16>
    %cst = arith.constant dense<0.000000e+00> : vector<16x256xf32>
    %2 = tpu.matmul %0, %1, %cst {dimension_numbers = #tpu.dot_dimension_numbers<[1], [0], [0], [1], [0, 0, 1, 1], [], []>} : vector<16x32xbf16>, vector<32x256xbf16>, vector<16x256xf32> -> vector<16x256xf32>
    %c0_3 = arith.constant 0 : index
    %c0_4 = arith.constant 0 : index
    %3 = vector.load %arg2[%c0_3, %c0_4] : memref<16x1xf32, #tpu.memory_space<vmem>>, vector<16x1xf32>
    %c0_5 = arith.constant 0 : index
    %c0_6 = arith.constant 0 : index
    %4 = vector.load %arg4[%c0_5, %c0_6] : memref<1x256xf32, #tpu.memory_space<vmem>>, vector<1x256xf32>
    %5 = vector.broadcast %3 : vector<16x1xf32> to vector<16x256xf32>
    %6 = vector.broadcast %4 : vector<1x256xf32> to vector<16x256xf32>
    %7 = arith.mulf %5, %6 : vector<16x256xf32>
    %8 = arith.addf %2, %7 : vector<16x256xf32>
    %c0_7 = arith.constant 0 : index
    %c0_8 = arith.constant 0 : index
    %9 = vector.load %arg5[%c0_7, %c0_8] : memref<1x256xf32, #tpu.memory_space<vmem>>, vector<1x256xf32>
    %10 = vector.broadcast %9 : vector<1x256xf32> to vector<16x256xf32>
    %11 = arith.addf %8, %10 : vector<16x256xf32>
    %cst_9 = arith.constant 0.000000e+00 : f32
    %12 = vector.broadcast %cst_9 : f32 to vector<16x256xf32>
    %13 = arith.maximumf %11, %12 : vector<16x256xf32>
    %14 = arith.truncf %13 : vector<16x256xf32> to vector<16x256xbf16>
    %c0_10 = arith.constant 0 : index
    %c0_11 = arith.constant 0 : index
    %15 = vector.load %arg6[%c0_10, %c0_11] : memref<256x256xbf16, #tpu.memory_space<vmem>>, vector<256x256xbf16>
    %cst_12 = arith.constant dense<0.000000e+00> : vector<16x256xf32>
    %16 = tpu.matmul %14, %15, %cst_12 {dimension_numbers = #tpu.dot_dimension_numbers<[1], [0], [0], [1], [0, 0, 1, 1], [], []>} : vector<16x256xbf16>, vector<256x256xbf16>, vector<16x256xf32> -> vector<16x256xf32>
    %c0_13 = arith.constant 0 : index
    %c0_14 = arith.constant 0 : index
    %17 = vector.load %arg7[%c0_13, %c0_14] : memref<1x256xf32, #tpu.memory_space<vmem>>, vector<1x256xf32>
    %18 = vector.broadcast %17 : vector<1x256xf32> to vector<16x256xf32>
    %19 = arith.addf %16, %18 : vector<16x256xf32>
    %cst_15 = arith.constant 0.000000e+00 : f32
    %20 = vector.broadcast %cst_15 : f32 to vector<16x256xf32>
    %21 = arith.maximumf %19, %20 : vector<16x256xf32>
    %22 = arith.truncf %21 : vector<16x256xf32> to vector<16x256xbf16>
    %c0_16 = arith.constant 0 : index
    %c0_17 = arith.constant 0 : index
    %23 = vector.load %arg8[%c0_16, %c0_17] : memref<256x128xbf16, #tpu.memory_space<vmem>>, vector<256x128xbf16>
    %cst_18 = arith.constant dense<0.000000e+00> : vector<16x128xf32>
    %24 = tpu.matmul %22, %23, %cst_18 {dimension_numbers = #tpu.dot_dimension_numbers<[1], [0], [0], [1], [0, 0, 1, 1], [], []>} : vector<16x256xbf16>, vector<256x128xbf16>, vector<16x128xf32> -> vector<16x128xf32>
    %c0_19 = arith.constant 0 : index
    %c0_20 = arith.constant 0 : index
    %25 = vector.load %arg9[%c0_19, %c0_20] : memref<1x128xf32, #tpu.memory_space<vmem>>, vector<1x128xf32>
    %26 = vector.broadcast %25 : vector<1x128xf32> to vector<16x128xf32>
    %27 = arith.addf %24, %26 : vector<16x128xf32>
    %28 = math.tanh %27 : vector<16x128xf32>
    %29 = arith.truncf %28 : vector<16x128xf32> to vector<16x128xbf16>
    %c0_21 = arith.constant 0 : index
    %c0_22 = arith.constant 0 : index
    %30 = vector.load %arg10[%c0_21, %c0_22] : memref<16x128xbf16, #tpu.memory_space<vmem>>, vector<16x128xbf16>
    tpu.vector_store %arg10[%c0_21, %c0_22], %29 {strides = array<i32>} : memref<16x128xbf16, #tpu.memory_space<vmem>>, vector<16x128xbf16>,
    return
  }
  func.func @transform_0(%arg0: i32) -> (i32, i32) {
    %c0_i32 = arith.constant 0 : i32
    %c0_i32_0 = arith.constant 0 : i32
    return %arg0, %c0_i32 : i32, i32
  }
  func.func @transform_1(%arg0: i32) -> (i32, i32) {
    %c0_i32 = arith.constant 0 : i32
    %c0_i32_0 = arith.constant 0 : i32
    return %arg0, %c0_i32 : i32, i32
  }
  func.func @transform_2(%arg0: i32) -> (i32, i32) {
    %c0_i32 = arith.constant 0 : i32
    %c0_i32_0 = arith.constant 0 : i32
    %c0_i32_1 = arith.constant 0 : i32
    return %c0_i32, %c0_i32_0 : i32, i32
  }
  func.func @transform_3(%arg0: i32) -> (i32, i32) {
    %c0_i32 = arith.constant 0 : i32
    %c0_i32_0 = arith.constant 0 : i32
    %c0_i32_1 = arith.constant 0 : i32
    return %c0_i32, %c0_i32_0 : i32, i32
  }
  func.func @transform_4(%arg0: i32) -> (i32, i32) {
    %c0_i32 = arith.constant 0 : i32
    %c0_i32_0 = arith.constant 0 : i32
    %c0_i32_1 = arith.constant 0 : i32
    return %c0_i32, %c0_i32_0 : i32, i32
  }
  func.func @transform_5(%arg0: i32) -> (i32, i32) {
    %c0_i32 = arith.constant 0 : i32
    %c0_i32_0 = arith.constant 0 : i32
    %c0_i32_1 = arith.constant 0 : i32
    return %c0_i32, %c0_i32_0 : i32, i32
  }
  func.func @transform_6(%arg0: i32) -> (i32, i32) {
    %c0_i32 = arith.constant 0 : i32
    %c0_i32_0 = arith.constant 0 : i32
    %c0_i32_1 = arith.constant 0 : i32
    return %c0_i32, %c0_i32_0 : i32, i32
  }
  func.func @transform_7(%arg0: i32) -> (i32, i32) {
    %c0_i32 = arith.constant 0 : i32
    %c0_i32_0 = arith.constant 0 : i32
    %c0_i32_1 = arith.constant 0 : i32
    return %c0_i32, %c0_i32_0 : i32, i32
  }
  func.func @transform_8(%arg0: i32) -> (i32, i32) {
    %c0_i32 = arith.constant 0 : i32
    %c0_i32_0 = arith.constant 0 : i32
    %c0_i32_1 = arith.constant 0 : i32
    return %c0_i32, %c0_i32_0 : i32, i32
  }
  func.func @transform_9(%arg0: i32) -> (i32, i32) {
    %c0_i32 = arith.constant 0 : i32
    %c0_i32_0 = arith.constant 0 : i32
    return %arg0, %c0_i32 : i32, i32
  }
}

</mosaic_0001>

<bundles_post_ra>
// kernel: drqv2_actor_forward.1
= control target key start
LH: loop header
LB: loop body
LE: loop exit
PB: predicated region body
PF: predicated region fallthrough
CT: control target
= control target key end

     0   :  { %14 = vsyncpa [#allocation3], 0  ;;  %s1046_s0 = inlined_call_operand.vmem [shape: bf16[16,32], index: 0, kind: input, shape index: {}]   ;;  %s1047_s1 = inlined_call_operand.vmem [shape: f32[16,1], index: 1, kind: input, shape index: {}]   ;;  %s1048_s2 = inlined_call_operand.vmem [shape: bf16[32,256], index: 2, kind: input, shape index: {}]   ;;  %s1049_s3 = inlined_call_operand.vmem [shape: f32[1,256], index: 3, kind: input, shape index: {}]   ;;  %s1050_s4 = inlined_call_operand.vmem [shape: f32[1,256], index: 4, kind: input, shape index: {}]   ;;  %s1051_s5 = inlined_call_operand.hbm [shape: bf16[256,256], index: 5, kind: input, shape index: {}]   ;;  %s1052_s6 = inlined_call_operand.vmem [shape: f32[1,256], index: 6, kind: input, shape index: {}]   ;;  %s1053_s7 = inlined_call_operand.hbm [shape: bf16[256,128], index: 7, kind: input, shape index: {}]   ;;  %s1054_s8 = inlined_call_operand.vmem [shape: f32[1,128], index: 8, kind: input, shape index: {}]   ;;  %s1055_s9 = inlined_call_operand.vmem [shape: bf16[16,128], index: 9, kind: output, shape index: {}]  }
   0x1   :  { %s30_s11 = sshll.u32 %s1051_s5, 4  ;;  %s31_s11 = int_to_ptr.hbm [resolvable:$true] %s30_s11 }
   0x2   :  { %15 = vsyncpa [#allocation5], 0  ;;  %s935_s12 = smov [#allocation2]   ;;  %s45_s16 = sshll.u32 %s1053_s7, 4  ;;  %s46_s16 = int_to_ptr.hbm [resolvable:$true] %s45_s16 }
   0x3   :  { %s32_s13 = sshll.u32 %s935_s12, 4  ;;  %s936_s17 = smov 128   ;;  %s33_s13 = int_to_ptr.vmem [resolvable:$true] %s32_s13 }
   0x4   :  { %s937_s18 = smov 8   ;;  %s938_s19 = smov [#allocation4]  }
   0x5   :  { %38 = dma.hbm_to_vmem [thread:$0]  %s31_s11, 4096, %s33_s13, [#allocation3], %s936_s17, %s936_s17, %s937_s18  }
   0x6   :  { %s47_s20 = sshll.u32 %s938_s19, 4  ;;  %s939_s21 = smov 64   ;;  %s48_s20 = int_to_ptr.vmem [resolvable:$true] %s47_s20 }
   0x7   :  { %s940_s22 = smov 4  }
   0x8   :  { %53 = dma.hbm_to_vmem [thread:$0]  %s46_s16, 2048, %s48_s20, [#allocation5], %s939_s21, %s939_s21, %s940_s22  }
   0x9   :  { %931 = dma.done.wait [#allocation3], 4096  }
   0xa   :  { %932 = vsyncadd [#allocation3], 4294963200 }
   0xb   :  { %933 = dma.done.wait [#allocation5], 2048  }
   0xc   :  { %934 = vsyncadd [#allocation5], 4294965248  ;;  %v941_v0 = vmov 0   ;;  %v612_v1 = vld [vmem:[%s1048_s2 + $0x10] sm:$0xf]  ;;  %v71_v12 = vld [vmem:[%s1047_s1] sm:$0xff] }
   0xd   :  { %877 = vset.pattern.permute.xlu0 %v941_v0  ;;  %v816_v2 = vld [vmem:[%s1048_s2 + $0x14] sm:$0xf0]  ;;  %v815_v3 = vld [vmem:[%s1048_s2 + $0x14] sm:$0xf]  ;;  %v614_v5 = vld [vmem:[%s1048_s2 + $0x18] sm:$0xf0] }
   0xe   :  { %v613_v4 = vor.u32 %v816_v2, %v612_v1  ;;  %v604_v6 = vld [vmem:[%s1048_s2] sm:$0xf]  ;;  %v814_v7 = vld [vmem:[%s1048_s2 + $0x4] sm:$0xf0]  ;;  %v617_v8 = vor.u32 %v815_v3, %v614_v5  ;;  %v813_v9 = vld [vmem:[%s1048_s2 + $0x4] sm:$0xf]  ;;  %76 = vperm.xlu0 %877, %v71_v12  }
   0xf   :  { %v606_v10 = vld [vmem:[%s1048_s2 + $0x8] sm:$0xf0]  ;;  %v605_v11 = vor.u32 %v814_v7, %v604_v6  ;;  %v678_v13 = vld [vmem:[#allocation2 + $0x70] sm:$0xf]  ;;  %v812_v15 = vld [vmem:[%s1046_s0] sm:$0xff]  ;;  %vm118_vm0 = vcmask 261120  }
  0x10   :  { %128 = vmatpush.bf16.msra.mxu0 %v613_v4  ;;  %142 = vmatpush.bf16.msra.mxu1 %v617_v8  ;;  %v609_v14 = vor.u32 %v813_v9, %v606_v10  ;;  %v832_v16 = vld [vmem:[#allocation2 + $0x74] sm:$0xf0]  ;;  %v742_v17 = vld [vmem:[#allocation2 + $0xf0] sm:$0xf]  ;;  %v831_v21 = vld [vmem:[#allocation2 + $0x74] sm:$0xf] }
  0x11   :  { %v848_v18 = vld [vmem:[#allocation2 + $0xf4] sm:$0xf0]  ;;  %v679_v19 = vor.u32 %v832_v16, %v678_v13  ;;  %v680_v22 = vld [vmem:[#allocation2 + $0x78] sm:$0xf0]  ;;  %v847_v23 = vld [vmem:[#allocation2 + $0xf4] sm:$0xf] }
  0x12   :  { %v743_v20 = vor.u32 %v848_v18, %v742_v17  ;;  %v683_v24 = vor.u32 %v831_v21, %v680_v22  ;;  %v744_v25 = vld [vmem:[#allocation2 + $0xf8] sm:$0xf0]  ;;  %v670_v26 = vld [vmem:[#allocation2 + $0x60] sm:$0xf]  ;;  %v830_v27 = vld [vmem:[#allocation2 + $0x64] sm:$0xf0] }
  0x13   :  { %364 = vmatpush.bf16.msra.mxu2 %v679_v19  ;;  %v747_v28 = vor.u32 %v847_v23, %v744_v25  ;;  %v671_v29 = vor.u32 %v830_v27, %v670_v26  ;;  %v734_v30 = vld [vmem:[#allocation2 + $0xe0] sm:$0xf]  ;;  %v846_v31 = vld [vmem:[#allocation2 + $0xe4] sm:$0xf0]  ;;  %v829_v34 = vld [vmem:[#allocation2 + $0x64] sm:$0xf] }
  0x14   :  { %129 = vmatpush.bf16.msra.mxu0 %v605_v11  ;;  %143 = vmatpush.bf16.msra.mxu1 %v609_v14  ;;  %v735_v32 = vor.u32 %v846_v31, %v734_v30  ;;  %v72_v33 = vld [vmem:[%s1047_s1 + $0x8] sm:$0xff]  ;;  %v845_v36 = vld [vmem:[#allocation2 + $0xe4] sm:$0xf]  ;;  %v662_v39 = vld [vmem:[#allocation2 + $0x50] sm:$0xf] }
  0x15   :  { %378 = vmatpush.bf16.msra.mxu3 %v743_v20  ;;  %v672_v35 = vld [vmem:[#allocation2 + $0x68] sm:$0xf0]  ;;  %v828_v40 = vld [vmem:[#allocation2 + $0x54] sm:$0xf0]  ;;  %v726_v43 = vld [vmem:[#allocation2 + $0xd0] sm:$0xf] }
  0x16   :  { %81 = vperm.xlu0 %877, %v72_v33   ;;  %v675_v37 = vor.u32 %v829_v34, %v672_v35  ;;  %v736_v38 = vld [vmem:[#allocation2 + $0xe8] sm:$0xf0]  ;;  %v663_v42 = vor.u32 %v828_v40, %v662_v39  ;;  %v844_v44 = vld [vmem:[#allocation2 + $0xd4] sm:$0xf0]  ;;  %v827_v45 = vld [vmem:[#allocation2 + $0x54] sm:$0xf] }
  0x17   :  { %618 = vmatmul.msk.bf16.vlgmr.msra.gmra.mxu0 %vm118_vm0, %v812_v15  ;;  %619 = vmatmul.msk.bf16.vlgmr.msra.gmra.mxu1 %vm118_vm0, %v812_v15  ;;  %v739_v41 = vor.u32 %v845_v36, %v736_v38  ;;  %v727_v46 = vor.u32 %v844_v44, %v726_v43  ;;  %v664_v47 = vld [vmem:[#allocation2 + $0x58] sm:$0xf0]  ;;  %v843_v48 = vld [vmem:[#allocation2 + $0xd4] sm:$0xf]  ;;  %v654_v52 = vld [vmem:[#allocation2 + $0x40] sm:$0xf] }
  0x18   :  { %392 = vmatpush.bf16.msrb.mxu0 %v683_v24  ;;  %406 = vmatpush.bf16.msrb.mxu1 %v747_v28  ;;  %v728_v49 = vld [vmem:[#allocation2 + $0xd8] sm:$0xf0]  ;;  %v667_v50 = vor.u32 %v827_v45, %v664_v47  ;;  %v826_v53 = vld [vmem:[#allocation2 + $0x44] sm:$0xf0]  ;;  %v718_v54 = vld [vmem:[#allocation2 + $0xc0] sm:$0xf] }
  0x19   :  { %365 = vmatpush.bf16.msra.mxu2 %v671_v29  ;;  %379 = vmatpush.bf16.msra.mxu3 %v735_v32  ;;  %v731_v51 = vor.u32 %v843_v48, %v728_v49  ;;  %v655_v55 = vor.u32 %v826_v53, %v654_v52  ;;  %v842_v56 = vld [vmem:[#allocation2 + $0xc4] sm:$0xf0]  ;;  %v825_v58 = vld [vmem:[#allocation2 + $0x44] sm:$0xf]  ;;  %v656_v59 = vld [vmem:[#allocation2 + $0x48] sm:$0xf0] }
  0x1a   :  { %v719_v57 = vor.u32 %v842_v56, %v718_v54  ;;  %v841_v60 = vld [vmem:[#allocation2 + $0xc4] sm:$0xf]  ;;  %v659_v61 = vor.u32 %v825_v58, %v656_v59  ;;  %v720_v62 = vld [vmem:[#allocation2 + $0xc8] sm:$0xf0]  ;;  %v646_v0 = vld [vmem:[#allocation2 + $0x30] sm:$0xf] }
  0x1b   :  { %v723_v63 = vor.u32 %v841_v60, %v720_v62  ;;  %v824_v1 = vld [vmem:[#allocation2 + $0x34] sm:$0xf0]  ;;  %v710_v2 = vld [vmem:[#allocation2 + $0xb0] sm:$0xf]  ;;  %v823_v5 = vld [vmem:[#allocation2 + $0x34] sm:$0xf] }
  0x1c   :  { %393 = vmatpush.bf16.msrb.mxu0 %v675_v37  ;;  %407 = vmatpush.bf16.msrb.mxu1 %v739_v41  ;;  %v647_v3 = vor.u32 %v824_v1, %v646_v0  ;;  %v840_v4 = vld [vmem:[#allocation2 + $0xb4] sm:$0xf0]  ;;  %v648_v7 = vld [vmem:[#allocation2 + $0x38] sm:$0xf0]  ;;  %v839_v8 = vld [vmem:[#allocation2 + $0xb4] sm:$0xf] }
  0x1d   :  { %366 = vmatpush.bf16.msra.mxu2 %v663_v42  ;;  %380 = vmatpush.bf16.msra.mxu3 %v727_v46  ;;  %v711_v6 = vor.u32 %v840_v4, %v710_v2  ;;  %v651_v9 = vor.u32 %v823_v5, %v648_v7  ;;  %v712_v10 = vld [vmem:[#allocation2 + $0xb8] sm:$0xf0]  ;;  %v638_v12 = vld [vmem:[#allocation2 + $0x20] sm:$0xf]  ;;  %v822_v13 = vld [vmem:[#allocation2 + $0x24] sm:$0xf0] }
  0x1e   :  { %v715_v11 = vor.u32 %v839_v8, %v712_v10  ;;  %v702_v14 = vld [vmem:[#allocation2 + $0xa0] sm:$0xf]  ;;  %v639_v15 = vor.u32 %v822_v13, %v638_v12  ;;  %v838_v16 = vld [vmem:[#allocation2 + $0xa4] sm:$0xf0]  ;;  %v821_v17 = vld [vmem:[#allocation2 + $0x24] sm:$0xf] }
  0x1f   :  { %v640_v18 = vld [vmem:[#allocation2 + $0x28] sm:$0xf0]  ;;  %v703_v19 = vor.u32 %v838_v16, %v702_v14  ;;  %v837_v21 = vld [vmem:[#allocation2 + $0xa4] sm:$0xf]  ;;  %v630_v24 = vld [vmem:[#allocation2 + $0x10] sm:$0xf] }
  0x20   :  { %394 = vmatpush.bf16.msrb.mxu0 %v667_v50  ;;  %408 = vmatpush.bf16.msrb.mxu1 %v731_v51  ;;  %v643_v20 = vor.u32 %v821_v17, %v640_v18  ;;  %v704_v22 = vld [vmem:[#allocation2 + $0xa8] sm:$0xf0]  ;;  %v820_v25 = vld [vmem:[#allocation2 + $0x14] sm:$0xf0]  ;;  %v694_v26 = vld [vmem:[#allocation2 + $0x90] sm:$0xf] }
  0x21   :  { %367 = vmatpush.bf16.msra.mxu2 %v655_v55  ;;  %381 = vmatpush.bf16.msra.mxu3 %v719_v57  ;;  %v707_v23 = vor.u32 %v837_v21, %v704_v22  ;;  %v631_v27 = vor.u32 %v820_v25, %v630_v24  ;;  %v836_v28 = vld [vmem:[#allocation2 + $0x94] sm:$0xf0]  ;;  %v819_v29 = vld [vmem:[#allocation2 + $0x14] sm:$0xf]  ;;  %v632_v30 = vld [vmem:[#allocation2 + $0x18] sm:$0xf0] }
  0x22   :  { %v695_v31 = vor.u32 %v836_v28, %v694_v26  ;;  %v635_v32 = vor.u32 %v819_v29, %v632_v30  ;;  %v835_v33 = vld [vmem:[#allocation2 + $0x94] sm:$0xf]  ;;  %v696_v34 = vld [vmem:[#allocation2 + $0x98] sm:$0xf0]  ;;  %v622_v36 = vld [vmem:[#allocation2] sm:$0xf] }
  0x23   :  { %v699_v35 = vor.u32 %v835_v33, %v696_v34  ;;  %v818_v37 = vld [vmem:[#allocation2 + $0x4] sm:$0xf0]  ;;  %v686_v38 = vld [vmem:[#allocation2 + $0x80] sm:$0xf]  ;;  %v817_v41 = vld [vmem:[#allocation2 + $0x4] sm:$0xf] }
  0x24   :  { %395 = vmatpush.bf16.msrb.mxu0 %v659_v61  ;;  %409 = vmatpush.bf16.msrb.mxu1 %v723_v63  ;;  %v623_v39 = vor.u32 %v818_v37, %v622_v36  ;;  %v834_v40 = vld [vmem:[#allocation2 + $0x84] sm:$0xf0]  ;;  %v624_v42 = vld [vmem:[#allocation2 + $0x8] sm:$0xf0]  ;;  %v833_v45 = vld [vmem:[#allocation2 + $0x84] sm:$0xf] }
  0x25   :  { %368 = vmatpush.bf16.msra.mxu2 %v647_v3  ;;  %382 = vmatpush.bf16.msra.mxu3 %v711_v6  ;;  %v687_v43 = vor.u32 %v834_v40, %v686_v38  ;;  %v627_v44 = vor.u32 %v817_v41, %v624_v42  ;;  %v688_v46 = vld [vmem:[#allocation2 + $0x88] sm:$0xf0]  ;;  %v864_v48 = vld [vmem:[#allocation4 + $0x78] sm:$0xff]  ;;  %v863_v50 = vld [vmem:[#allocation4 + $0x70] sm:$0xff] }
  0x26   :  { %v691_v47 = vor.u32 %v833_v45, %v688_v46  ;;  %v856_v49 = vld [vmem:[#allocation4 + $0x38] sm:$0xff]  ;;  %v855_v51 = vld [vmem:[#allocation4 + $0x30] sm:$0xff]  ;;  %v862_v52 = vld [vmem:[#allocation4 + $0x68] sm:$0xff] }
  0x27   :  { %v73_v53 = vld [vmem:[%s1049_s3] sm:$0x3]  ;;  %v860_v21 = vld [vmem:[#allocation4 + $0x58] sm:$0xff]  ;;  %v858_v25 = vld [vmem:[#allocation4 + $0x48] sm:$0xff] }
  0x28   :  { %396 = vmatpush.bf16.msrb.mxu0 %v651_v9  ;;  %410 = vmatpush.bf16.msrb.mxu1 %v715_v11  ;;  %v861_v55 = vld [vmem:[#allocation4 + $0x60] sm:$0xff]  ;;  %v85_v56 = vperm.slane %v73_v53, 0  ;;  %v86_v57 = vperm.slane %v73_v53, 1  ;;  %v852_v24 = vld [vmem:[#allocation4 + $0x18] sm:$0xff]  ;;  %v851_v26 = vld [vmem:[#allocation4 + $0x10] sm:$0xff] }
  0x29   :  { %369 = vmatpush.bf16.msra.mxu2 %v639_v15  ;;  %383 = vmatpush.bf16.msra.mxu3 %v703_v19  ;;  %v150_v62 = vld [vmem:[%s1050_s4] sm:$0x3]  ;;  %v850_v28 = vld [vmem:[#allocation4 + $0x8] sm:$0xff] }
  0x2a   :  { %v152_v1 = vperm.slane %v150_v62, 0  ;;  %v153_v3 = vperm.slane %v150_v62, 1  ;;  %v853_v22 = vld [vmem:[#allocation4 + $0x20] sm:$0xff] }
  0x2b   :  { %v849_v29 = vld [vmem:[#allocation4] sm:$0xff] }
  0x2c   :  { %397 = vmatpush.bf16.msrb.mxu0 %v643_v20  ;;  %411 = vmatpush.bf16.msrb.mxu1 %v707_v23  ;;  %v854_v20 = vld [vmem:[#allocation4 + $0x28] sm:$0xff]  ;;  %v859_v23 = vld [vmem:[#allocation4 + $0x50] sm:$0xff]  ;;  %v198_v30 = vld [vmem:[%s1052_s6] sm:$0x3] }
  0x2d   :  { %370 = vmatpush.bf16.msra.mxu2 %v631_v27  ;;  %384 = vmatpush.bf16.msra.mxu3 %v695_v31  ;;  %v857_v27 = vld [vmem:[#allocation4 + $0x40] sm:$0xff]  ;;  %v200_v36 = vperm.slane %v198_v30, 0 }
  0x30   :  { %398 = vmatpush.bf16.msrb.mxu0 %v635_v32  ;;  %412 = vmatpush.bf16.msrb.mxu1 %v699_v35  ;;  %v201_v32 = vperm.slane %v198_v30, 1 }
  0x31   :  { %371 = vmatpush.bf16.msra.mxu2 %v623_v39  ;;  %385 = vmatpush.bf16.msra.mxu3 %v687_v43 }
  0x34   :  { %399 = vmatpush.bf16.msrb.mxu0 %v627_v44  ;;  %413 = vmatpush.bf16.msrb.mxu1 %v691_v47 }
  0x35   :  { %572 = vmatpush.bf16.msrb.mxu3 %v864_v48  ;;  %558 = vmatpush.bf16.msrb.mxu2 %v856_v49 }
  0x39   :  { %573 = vmatpush.bf16.msrb.mxu3 %v863_v50  ;;  %559 = vmatpush.bf16.msrb.mxu2 %v855_v51 }
  0x3d   :  { %574 = vmatpush.bf16.msrb.mxu3 %v862_v52  ;;  %560 = vmatpush.bf16.msrb.mxu2 %v854_v20 }
  0x41   :  { %575 = vmatpush.bf16.msrb.mxu3 %v861_v55  ;;  %561 = vmatpush.bf16.msrb.mxu2 %v853_v22 }
  0x45   :  { %576 = vmatpush.bf16.msrb.mxu3 %v860_v21  ;;  %562 = vmatpush.bf16.msrb.mxu2 %v852_v24 }
  0x49   :  { %577 = vmatpush.bf16.msrb.mxu3 %v859_v23  ;;  %563 = vmatpush.bf16.msrb.mxu2 %v851_v26 }
  0x4d   :  { %578 = vmatpush.bf16.msrb.mxu3 %v858_v25  ;;  %564 = vmatpush.bf16.msrb.mxu2 %v850_v28 }
  0x51   :  { %579 = vmatpush.bf16.msrb.mxu3 %v857_v27  ;;  %565 = vmatpush.bf16.msrb.mxu2 %v849_v29 }
  0x80   :  { %v77_v54 = vpop.permute.xlu0 %76 }
  0x81   :  { %v89_v59 = vmul.f32 %v85_v56, %v77_v54  ;;  %v90_v61 = vmul.f32 %v86_v57, %v77_v54 }
  0x88   :  { %v82_v63 = vpop.permute.xlu0 %81 }
  0x89   :  { %v91_v4 = vmul.f32 %v85_v56, %v82_v63  ;;  %v92_v5 = vmul.f32 %v86_v57, %v82_v63  ;;  %v878_v56 = vld [vmem:[%s1054_s8] ss:$0 sm:$0xff] }
  0x94   :  { %v131_v58 = vpop.f32.mrf.mxu0  ;;  %v145_v60 = vpop.f32.mrf.mxu1 }
  0x95   :  { %v132_v0 = vadd.f32 %v131_v58, %v89_v59  ;;  %v146_v2 = vadd.f32 %v145_v60, %v90_v61 }
  0x97   :  { %v156_v7 = vadd.f32 %v152_v1, %v132_v0  ;;  %v157_v10 = vadd.f32 %v153_v3, %v146_v2 }
  0x99   :  { %v160_v14 = vmax.f32 %v156_v7, 0.0  ;;  %v161_v16 = vmax.f32 %v157_v10, 0.0 }
  0x9c   :  { %v133_v6 = vpop.f32.mrf.mxu0  ;;  %v147_v9 = vpop.f32.mrf.mxu1 }
  0x9d   :  { %v134_v8 = vadd.f32 %v133_v6, %v91_v4  ;;  %v148_v11 = vadd.f32 %v147_v9, %v92_v5 }
  0x9f   :  { %v158_v12 = vadd.f32 %v152_v1, %v134_v8  ;;  %v159_v13 = vadd.f32 %v153_v3, %v148_v11 }
  0xa1   :  { %v162_v15 = vmax.f32 %v158_v12, 0.0  ;;  %v163_v17 = vmax.f32 %v159_v13, 0.0 }
  0xa3   :  { %v164_v18 = vpack.c.bf16 %v162_v15, %v160_v14  ;;  %v165_v19 = vpack.c.bf16 %v163_v17, %v161_v16 }
  0xa5   :  { %372 = vmatmul.bf16.vlgmr.msra.gmra.mxu2 %v164_v18  ;;  %400 = vmatmul.bf16.vlgmr.msrb.gmra.mxu0 %v164_v18 }
  0xa6   :  { %386 = vmatmul.bf16.vlgmr.msra.gmra.mxu3 %v165_v19  ;;  %414 = vmatmul.bf16.vlgmr.msrb.gmra.mxu1 %v165_v19 }
 0x122   :  { %v401_v31 = vpop.f32.mrf.mxu0 }
 0x123   :  { %v415_v33 = vpop.f32.mrf.mxu1  ;;  %v402_v34 = vadd.f32 %v401_v31, %v201_v32 }
 0x125   :  { %v416_v39 = vadd.f32 %v415_v33, %v402_v34 }
 0x127   :  { %v421_v44 = vmax.f32 %v416_v39, 0.0 }
 0x128   :  { %v373_v35 = vpop.f32.mrf.mxu2 }
 0x129   :  { %v387_v37 = vpop.f32.mrf.mxu3  ;;  %v374_v42 = vadd.f32 %v373_v35, %v200_v36 }
 0x12a   :  { %v403_v38 = vpop.f32.mrf.mxu0 }
 0x12b   :  { %v404_v40 = vadd.f32 %v403_v38, %v201_v32  ;;  %v417_v41 = vpop.f32.mrf.mxu1  ;;  %v388_v47 = vadd.f32 %v387_v37, %v374_v42 }
 0x12d   :  { %v418_v43 = vadd.f32 %v417_v41, %v404_v40  ;;  %v420_v52 = vmax.f32 %v388_v47, 0.0 }
 0x12f   :  { %v423_v45 = vmax.f32 %v418_v43, 0.0 }
 0x130   :  { %v375_v46 = vpop.f32.mrf.mxu2 }
 0x131   :  { %v425_v48 = vpack.c.bf16 %v423_v45, %v421_v44  ;;  %v376_v49 = vadd.f32 %v375_v46, %v200_v36  ;;  %v389_v50 = vpop.f32.mrf.mxu3 }
 0x133   :  { %v390_v51 = vadd.f32 %v389_v50, %v376_v49  ;;  %580 = vmatmul.bf16.vlgmr.msrb.gmra.mxu3 %v425_v48 }
 0x135   :  { %v422_v53 = vmax.f32 %v390_v51, 0.0 }
 0x137   :  { %v424_v54 = vpack.c.bf16 %v422_v53, %v420_v52 }
 0x139   :  { %566 = vmatmul.bf16.vlgmr.msrb.gmra.mxu2 %v424_v54 }
 0x1b6   :  { %v581_v55 = vpop.f32.mrf.mxu3 }
 0x1bc   :  { %v567_v57 = vpop.f32.mrf.mxu2 }
 0x1bd   :  { %v568_v58 = vadd.f32 %v878_v56, %v567_v57 }
 0x1be   :  { %v583_v62 = vpop.f32.mrf.mxu3 }
 0x1bf   :  { %v582_v59 = vadd.f32 %v581_v55, %v568_v58 }
 0x1c1   :  { %879 = vtanh.f32 %v582_v59 }
 0x1c4   :  { %v569_v60 = vpop.f32.mrf.mxu2 }
 0x1c5   :  { %v570_v61 = vadd.f32 %v878_v56, %v569_v60 }
 0x1c7   :  { %v584_v63 = vadd.f32 %v583_v62, %v570_v61  ;;  %v880_v0 = vpop.eup %879 }
 0x1c9   :  { %881 = vtanh.f32 %v584_v63 }
 0x1cf   :  { %v882_v1 = vpop.eup %881 }
 0x1d0   :  { %v868_v2 = vpack.c.bf16 %v882_v1, %v880_v0 }
 0x1d2   :  { %869 = vst [vmem:[%s1055_s9] sm:$0xff] %v868_v2  }
 0x1d3   :  { %596 = vsyncpa [#allocation3], 1 }
 0x1d4   :  { %597 = vsyncpa [#allocation5], 1 }

</bundles_post_ra>
